<compile_context>
chip_gen: v6e
topology: v6e:2x2x1
jax: 0.10.0
libtpu: 0.0.40
codegen_flags: <defaults>
</compile_context>

<pallas_src>
import functools

import jax
import jax.numpy as jnp
import numpy as np
from jax import lax
from jax.experimental import pallas as pl
from jax.experimental.pallas import tpu as pltpu


def _round_up(x, m):
    return ((x + m - 1) // m) * m


# ----------------------------------------------------------------------------
# Kernel 1: tiled linear projection  y = x @ w (+ bias)
# ----------------------------------------------------------------------------
def _linear_kernel(x_ref, w_ref, b_ref, o_ref, acc_ref):
    @pl.when(pl.program_id(2) == 0)
    def _():
        acc_ref[...] = jnp.zeros_like(acc_ref)

    acc_ref[...] += jnp.dot(x_ref[...], w_ref[...],
                            preferred_element_type=jnp.float32)

    @pl.when(pl.program_id(2) == pl.num_programs(2) - 1)
    def _():
        o_ref[...] = (acc_ref[...] + b_ref[...]).astype(o_ref.dtype)


def pallas_linear(x2d, w_io, bias=None, *, tm=256, tn=256, tk=512):
    """y = x2d @ w_io (+ bias).  x2d: (M, K), w_io: (K, N), bias: (N,) or None."""
    M, K = x2d.shape
    K2, N = w_io.shape
    assert K == K2
    dtype = x2d.dtype

    # Tiles clamped to padded array sizes; padded dims made tile-divisible.
    tm = min(tm, _round_up(M, 8))
    tn = min(tn, _round_up(N, 128))
    tk = min(tk, _round_up(K, 128))
    Mp, Np, Kp = _round_up(M, tm), _round_up(N, tn), _round_up(K, tk)

    xp = x2d if (Mp == M and Kp == K) else jnp.pad(x2d, ((0, Mp - M), (0, Kp - K)))
    wp = w_io if (Kp == K and Np == N) else jnp.pad(w_io, ((0, Kp - K), (0, Np - N)))
    b = jnp.zeros((N,), jnp.float32) if bias is None else bias.astype(jnp.float32)
    bp = (b if Np == N else jnp.pad(b, (0, Np - N))).reshape(1, Np)

    out = pl.pallas_call(
        _linear_kernel,
        out_shape=jax.ShapeDtypeStruct((Mp, Np), dtype),
        grid=(Mp // tm, Np // tn, Kp // tk),
        in_specs=[
            pl.BlockSpec((tm, tk), lambda i, j, k: (i, k)),
            pl.BlockSpec((tk, tn), lambda i, j, k: (k, j)),
            pl.BlockSpec((1, tn), lambda i, j, k: (0, j)),
        ],
        out_specs=pl.BlockSpec((tm, tn), lambda i, j, k: (i, j)),
        scratch_shapes=[pltpu.VMEM((tm, tn), jnp.float32)],
        compiler_params=pltpu.CompilerParams(
            dimension_semantics=("parallel", "parallel", "arbitrary")),
    )(xp, wp, bp)

    if Mp != M or Np != N:
        out = out[:M, :N]
    return out


# ----------------------------------------------------------------------------
# Kernel 2: per-(batch, head-group) attention on head-merged layouts
# ----------------------------------------------------------------------------
def _pick_heads_per_block(heads, dim_head):
    """Smallest head group whose feature width is a multiple of 128 lanes;
    falls back to all heads (block == full inner dim, always a legal block)."""
    for hb in range(1, heads + 1):
        if heads % hb == 0 and (hb * dim_head) % 128 == 0:
            return hb
    return heads


def _mha_kernel(q_ref, k_ref, v_ref, o_ref, *, heads_per_block, dim_head, scale,
                mxu_dtype):
    """out = softmax(q k^T * scale) v for one (batch, head-group) block.

    q_ref: (1, N, hb*d), k_ref/v_ref: (1, M, hb*d), o_ref: (1, N, hb*d).
    """
    exact = np.dtype(mxu_dtype) == np.dtype(jnp.float32)
    q = q_ref[0].astype(jnp.float32) * scale      # scale folded into (N, hb*d) q
    k = k_ref[0]
    v = v_ref[0]
    d = dim_head

    head_outs = []
    for h in range(heads_per_block):              # static unroll over the group
        lo, hi = h * d, (h + 1) * d
        qh = q[:, lo:hi].astype(mxu_dtype)
        kh = k[:, lo:hi].astype(mxu_dtype)
        vh = v[:, lo:hi].astype(mxu_dtype)
        # QK^T with contraction on the last dims of both operands (no transpose).
        sim = lax.dot_general(qh, kh, (((1,), (1,)), ((), ())),
                              preferred_element_type=jnp.float32)     # (N, M)
        sim_max = jnp.max(sim, axis=-1, keepdims=True)
        p = jnp.exp(sim - sim_max)                                     # f32 softmax
        denom = jnp.sum(p, axis=-1, keepdims=True)
        acc = jnp.dot(p.astype(mxu_dtype), vh,
                      preferred_element_type=jnp.float32)              # (N, d)
        inv = (1.0 / denom) if exact else pl.reciprocal(denom, approx=True)
        head_outs.append(acc * inv)

    # Single (lane-dense when hb*d % 128 == 0) store of the whole head group.
    o_ref[0] = jnp.concatenate(head_outs, axis=-1).astype(o_ref.dtype)


def pallas_attention(q_arr, k_arr, v_arr, *, heads, dim_head, scale,
                     mxu_dtype=jnp.bfloat16, q_off=0, k_off=0, v_off=0):
    """Multi-head attention on head-merged (B, L, H*d) layouts.

    q_arr/k_arr/v_arr may be packed projection outputs (e.g. a fused qkv array
    passed three times); *_off are head-group *block* offsets along the feature
    axis.  Returns (B, N, H*d) in the same head-merged layout (no transposes).
    """
    B, N = q_arr.shape[0], q_arr.shape[1]
    M = k_arr.shape[1]
    inner = heads * dim_head
    hb = _pick_heads_per_block(heads, dim_head)
    n_hg = heads // hb
    fb = hb * dim_head

    kernel = functools.partial(_mha_kernel, heads_per_block=hb, dim_head=dim_head,
                               scale=scale, mxu_dtype=mxu_dtype)
    return pl.pallas_call(
        kernel,
        out_shape=jax.ShapeDtypeStruct((B, N, inner), q_arr.dtype),
        grid=(B, n_hg),
        in_specs=[
            pl.BlockSpec((1, N, fb), lambda b, g, o=q_off: (b, 0, o + g)),
            pl.BlockSpec((1, M, fb), lambda b, g, o=k_off: (b, 0, o + g)),
            pl.BlockSpec((1, M, fb), lambda b, g, o=v_off: (b, 0, o + g)),
        ],
        out_specs=pl.BlockSpec((1, N, fb), lambda b, g: (b, 0, g)),
        compiler_params=pltpu.CompilerParams(
            dimension_semantics=("parallel", "parallel")),
    )(q_arr, k_arr, v_arr)


# ----------------------------------------------------------------------------
# CrossAttention module (forward only)
# ----------------------------------------------------------------------------
def init_cross_attention_params(key, query_dim, context_dim=None, heads=8, dim_head=64):
    context_dim = query_dim if context_dim is None else context_dim
    inner_dim = dim_head * heads
    kq, kk, kv, ko, kb = jax.random.split(key, 5)

    def lin_init(k, fan_in, shape):
        bound = 1.0 / np.sqrt(fan_in)
        return jax.random.uniform(k, shape, jnp.float32, -bound, bound)

    return {
        # PyTorch-style (out_features, in_features)
        "w_q": lin_init(kq, query_dim, (inner_dim, query_dim)),
        "w_k": lin_init(kk, context_dim, (inner_dim, context_dim)),
        "w_v": lin_init(kv, context_dim, (inner_dim, context_dim)),
        "w_o": lin_init(ko, inner_dim, (query_dim, inner_dim)),
        "b_o": lin_init(kb, inner_dim, (query_dim,)),
    }


def cross_attention_forward(params, x, context=None, *, heads, dim_head,
                            attn_mxu_dtype=jnp.bfloat16):
    """Mirrors CrossAttention.forward (dropout=0; mask is dead code)."""
    B, N, Dq = x.shape
    inner = heads * dim_head
    scale = dim_head ** (-0.5)

    if context is not None and context.shape[1] == 1:
        # "efficient" path: out = to_out(to_v(context)), repeated over N.
        # Absorb the two tiny GEMMs into one fused weight -> one kernel launch.
        Dc = context.shape[2]
        w_fused = (params["w_o"] @ params["w_v"]).T              # (Dc, Dq)
        out = pallas_linear(context.reshape(B, Dc), w_fused, params["b_o"])
        return jnp.broadcast_to(out.reshape(B, 1, Dq), (B, N, Dq))

    hb = _pick_heads_per_block(heads, dim_head)
    fb = hb * dim_head
    n_hg = heads // hb
    packed_ok = (fb % 128 == 0)   # packed feature-axis blocks must be lane-aligned

    if context is None:
        # Self-attention: single fused QKV matmul (one HBM pass over x).
        w_qkv = jnp.concatenate(
            [params["w_q"], params["w_k"], params["w_v"]], axis=0).T   # (Dq, 3*inner)
        qkv = pallas_linear(x.reshape(B * N, Dq), w_qkv).reshape(B, N, 3 * inner)
        if packed_ok:
            # Heads selected straight out of the packed qkv via the BlockSpec
            # feature-axis block index; no q/k/v slices materialized in HBM.
            q_arr = k_arr = v_arr = qkv
            q_off, k_off, v_off = 0, n_hg, 2 * n_hg
        else:
            q_arr = qkv[..., :inner]
            k_arr = qkv[..., inner:2 * inner]
            v_arr = qkv[..., 2 * inner:]
            q_off = k_off = v_off = 0
    else:
        M, Dc = context.shape[1], context.shape[2]
        q_arr = pallas_linear(x.reshape(B * N, Dq),
                              params["w_q"].T).reshape(B, N, inner)
        w_kv = jnp.concatenate([params["w_k"], params["w_v"]], axis=0).T
        kv = pallas_linear(context.reshape(B * M, Dc), w_kv).reshape(B, M, 2 * inner)
        q_off = 0
        if packed_ok:
            k_arr = v_arr = kv
            k_off, v_off = 0, n_hg
        else:
            k_arr, v_arr = kv[..., :inner], kv[..., inner:]
            k_off = v_off = 0

    o = pallas_attention(q_arr, k_arr, v_arr, heads=heads, dim_head=dim_head,
                         scale=scale, mxu_dtype=attn_mxu_dtype,
                         q_off=q_off, k_off=k_off, v_off=v_off)   # (B, N, inner)

    out = pallas_linear(o.reshape(B * N, inner), params["w_o"].T, params["b_o"])
    return out.reshape(B, N, Dq)


# ----------------------------------------------------------------------------
# Pure-JAX reference for correctness
# ----------------------------------------------------------------------------
def reference_forward(params, x, context=None, *, heads, dim_head):
    B, N, Dq = x.shape
    inner = heads * dim_head
    scale = dim_head ** (-0.5)
    if context is not None and context.shape[1] == 1:
        v = context @ params["w_v"].T
        out = v.reshape(B, 1, inner) @ params["w_o"].T + params["b_o"]
        return jnp.broadcast_to(out, (B, N, Dq))
    ctx = x if context is None else context
    M = ctx.shape[1]
    q = (x @ params["w_q"].T).reshape(B, N, heads, dim_head).transpose(0, 2, 1, 3)
    k = (ctx @ params["w_k"].T).reshape(B, M, heads, dim_head).transpose(0, 2, 1, 3)
    v = (ctx @ params["w_v"].T).reshape(B, M, heads, dim_head).transpose(0, 2, 1, 3)
    sim = jnp.einsum("bhid,bhjd->bhij", q, k) * scale
    attn = jax.nn.softmax(sim, axis=-1)
    o = jnp.einsum("bhij,bhjd->bhid", attn, v)
    o = o.transpose(0, 2, 1, 3).reshape(B, N, inner)
    return o @ params["w_o"].T + params["b_o"]


if __name__ == "__main__":
    root = jax.random.PRNGKey(0)
    kp, kx, kctx, kctx1, kp2, kx2 = jax.random.split(root, 6)

    # Tolerances allow for TPU default matmul precision (bf16 operand rounding)
    # differences between the XLA reference and the Pallas kernels.
    TOL_F32 = dict(rtol=2e-3, atol=2e-3)
    TOL_BF16 = dict(rtol=3e-2, atol=3e-2)

    # --- Config A: heads=4, dim_head=8 (inner=32 < 128 lanes; exercises the
    #     whole-inner-dim fallback head grouping). --------------------------------
    B, N, query_dim, heads, dim_head = 2, 8, 32, 4, 8
    params = init_cross_attention_params(kp, query_dim, None, heads, dim_head)
    x = jax.random.normal(kx, (B, N, query_dim), jnp.float32)
    ref = reference_forward(params, x, None, heads=heads, dim_head=dim_head)

    # 1) self-attention, f32 MXU operands
    out = cross_attention_forward(params, x, None, heads=heads, dim_head=dim_head,
                                  attn_mxu_dtype=jnp.float32)
    jax.block_until_ready(out)
    np.testing.assert_allclose(np.asarray(out), np.asarray(ref), **TOL_F32)

    # 2) self-attention, bf16 MXU operands (v6e/v7x fast path), f32 accumulation
    out_bf = cross_attention_forward(params, x, None, heads=heads, dim_head=dim_head,
                                     attn_mxu_dtype=jnp.bfloat16)
    jax.block_until_ready(out_bf)
    np.testing.assert_allclose(np.asarray(out_bf), np.asarray(ref), **TOL_BF16)

    # 3) cross-attention with a multi-token context (M != N, not a multiple of 8)
    Mctx = 6
    ctx = jax.random.normal(kctx, (B, Mctx, query_dim), jnp.float32)
    out_c = cross_attention_forward(params, x, ctx, heads=heads, dim_head=dim_head,
                                    attn_mxu_dtype=jnp.float32)
    jax.block_until_ready(out_c)
    ref_c = reference_forward(params, x, ctx, heads=heads, dim_head=dim_head)
    np.testing.assert_allclose(np.asarray(out_c), np.asarray(ref_c), **TOL_F32)

    # 4) "efficient" single-token context path (fused to_v/to_out weight)
    ctx1 = jax.random.normal(kctx1, (B, 1, query_dim), jnp.float32)
    out_e = cross_attention_forward(params, x, ctx1, heads=heads, dim_head=dim_head)
    jax.block_until_ready(out_e)
    ref_e = reference_forward(params, x, ctx1, heads=heads, dim_head=dim_head)
    np.testing.assert_allclose(np.asarray(out_e), np.asarray(ref_e), **TOL_F32)

    # --- Config B: heads=2, dim_head=64 (head group = 128 lanes; exercises the
    #     packed-qkv, lane-dense attention path). ---------------------------------
    B2, N2, qd2, h2, d2 = 2, 16, 64, 2, 64
    params2 = init_cross_attention_params(kp2, qd2, None, h2, d2)
    x2 = jax.random.normal(kx2, (B2, N2, qd2), jnp.float32)
    out2 = cross_attention_forward(params2, x2, None, heads=h2, dim_head=d2,
                                   attn_mxu_dtype=jnp.float32)
    jax.block_until_ready(out2)
    ref2 = reference_forward(params2, x2, None, heads=h2, dim_head=d2)
    np.testing.assert_allclose(np.asarray(out2), np.asarray(ref2), **TOL_F32)

    print("KERNEL_OK")
</pallas_src>

<mosaic_0001>
module attributes {stable_mosaic.version = 11 : i64} {
  func.func @_linear_kernel(%arg0: i32, %arg1: i32, %arg2: i32, %arg3: memref<16x128xf32, #tpu.memory_space<vmem>>, %arg4: memref<128x128xf32, #tpu.memory_space<vmem>>, %arg5: memref<1x128xf32, #tpu.memory_space<vmem>>, %arg6: memref<16x128xf32, #tpu.memory_space<vmem>>, %arg7: memref<16x128xf32, #tpu.memory_space<vmem>>) attributes {dimension_semantics = [#tpu.dimension_semantics<parallel>, #tpu.dimension_semantics<parallel>, #tpu.dimension_semantics<arbitrary>], iteration_bounds = array<i64: 1, 1, 1>, scalar_prefetch = 0 : i64, scratch_operands = 1 : i64, tpu.core_type = #tpu.core_type<tc>, window_params = [{transform_indices = @transform_0, window_bounds = array<i64: 16, 128>}, {transform_indices = @transform_1, window_bounds = array<i64: 128, 128>}, {transform_indices = @transform_2, window_bounds = array<i64: 1, 128>}, {transform_indices = @transform_3, window_bounds = array<i64: 16, 128>}]} {
    %c0_i32 = arith.constant 0 : i32
    %0 = arith.cmpi eq, %arg2, %c0_i32 : i32
    %1 = arith.extui %0 : i1 to i32
    %c0_i32_0 = arith.constant 0 : i32
    %2 = arith.cmpi ne, %1, %c0_i32_0 : i32
    scf.if %2 {
      %cst_10 = arith.constant 0.000000e+00 : f32
      %12 = vector.broadcast %cst_10 : f32 to vector<16x128xf32>
      %c0_11 = arith.constant 0 : index
      %c0_12 = arith.constant 0 : index
      %13 = vector.load %arg7[%c0_11, %c0_12] : memref<16x128xf32, #tpu.memory_space<vmem>>, vector<16x128xf32>
      tpu.vector_store %arg7[%c0_11, %c0_12], %12 {strides = array<i32>} : memref<16x128xf32, #tpu.memory_space<vmem>>, vector<16x128xf32>,
    } else {
    }
    %c0 = arith.constant 0 : index
    %c0_1 = arith.constant 0 : index
    %3 = vector.load %arg7[%c0, %c0_1] : memref<16x128xf32, #tpu.memory_space<vmem>>, vector<16x128xf32>
    %c0_2 = arith.constant 0 : index
    %c0_3 = arith.constant 0 : index
    %4 = vector.load %arg3[%c0_2, %c0_3] : memref<16x128xf32, #tpu.memory_space<vmem>>, vector<16x128xf32>
    %c0_4 = arith.constant 0 : index
    %c0_5 = arith.constant 0 : index
    %5 = vector.load %arg4[%c0_4, %c0_5] : memref<128x128xf32, #tpu.memory_space<vmem>>, vector<128x128xf32>
    %cst = arith.constant dense<0.000000e+00> : vector<16x128xf32>
    %6 = tpu.matmul %4, %5, %cst {dimension_numbers = #tpu.dot_dimension_numbers<[1], [0], [0], [1], [0, 0, 1, 1], [], []>} : vector<16x128xf32>, vector<128x128xf32>, vector<16x128xf32> -> vector<16x128xf32>
    %7 = arith.addf %3, %6 : vector<16x128xf32>
    %c0_6 = arith.constant 0 : index
    %c0_7 = arith.constant 0 : index
    %8 = vector.load %arg7[%c0_6, %c0_7] : memref<16x128xf32, #tpu.memory_space<vmem>>, vector<16x128xf32>
    tpu.vector_store %arg7[%c0_6, %c0_7], %7 {strides = array<i32>} : memref<16x128xf32, #tpu.memory_space<vmem>>, vector<16x128xf32>,
    %c0_i32_8 = arith.constant 0 : i32
    %9 = arith.cmpi eq, %arg2, %c0_i32_8 : i32
    %10 = arith.extui %9 : i1 to i32
    %c0_i32_9 = arith.constant 0 : i32
    %11 = arith.cmpi ne, %10, %c0_i32_9 : i32
    scf.if %11 {
      %c0_10 = arith.constant 0 : index
      %c0_11 = arith.constant 0 : index
      %12 = vector.load %arg7[%c0_10, %c0_11] : memref<16x128xf32, #tpu.memory_space<vmem>>, vector<16x128xf32>
      %c0_12 = arith.constant 0 : index
      %c0_13 = arith.constant 0 : index
      %13 = vector.load %arg5[%c0_12, %c0_13] : memref<1x128xf32, #tpu.memory_space<vmem>>, vector<1x128xf32>
      %14 = vector.broadcast %13 : vector<1x128xf32> to vector<16x128xf32>
      %15 = arith.addf %12, %14 : vector<16x128xf32>
      %c0_14 = arith.constant 0 : index
      %c0_15 = arith.constant 0 : index
      %16 = vector.load %arg6[%c0_14, %c0_15] : memref<16x128xf32, #tpu.memory_space<vmem>>, vector<16x128xf32>
      tpu.vector_store %arg6[%c0_14, %c0_15], %15 {strides = array<i32>} : memref<16x128xf32, #tpu.memory_space<vmem>>, vector<16x128xf32>,
    } else {
    }
    return
  }
  func.func @transform_0(%arg0: i32, %arg1: i32, %arg2: i32) -> (i32, i32) {
    %c0_i32 = arith.constant 0 : i32
    return %arg0, %arg2 : i32, i32
  }
  func.func @transform_1(%arg0: i32, %arg1: i32, %arg2: i32) -> (i32, i32) {
    %c0_i32 = arith.constant 0 : i32
    return %arg2, %arg1 : i32, i32
  }
  func.func @transform_2(%arg0: i32, %arg1: i32, %arg2: i32) -> (i32, i32) {
    %c0_i32 = arith.constant 0 : i32
    %c0_i32_0 = arith.constant 0 : i32
    return %c0_i32, %arg1 : i32, i32
  }
  func.func @transform_3(%arg0: i32, %arg1: i32, %arg2: i32) -> (i32, i32) {
    %c0_i32 = arith.constant 0 : i32
    return %arg0, %arg1 : i32, i32
  }
}

</mosaic_0001>

<bundles_post_ra>
// kernel: tpu_custom_call.1
= control target key start
LH: loop header
LB: loop body
LE: loop exit
PB: predicated region body
PF: predicated region fallthrough
CT: control target
= control target key end

     0   :  { %8 = vsyncpa [#allocation4], 0  ;;  %s353_s0 = inlined_call_operand.hbm [shape: f32[16,128], index: 0, kind: input, shape index: {}]   ;;  %s354_s1 = inlined_call_operand.hbm [shape: f32[128,128], index: 1, kind: input, shape index: {}]   ;;  %s355_s2 = inlined_call_operand.vmem [shape: f32[1,128], index: 2, kind: input, shape index: {}]   ;;  %s356_s3 = inlined_call_operand.hbm [shape: f32[16,128], index: 3, kind: output, shape index: {}]  }
   0x1   :  { %9 = vsyncpa [#allocation7], 0 }
   0x2   :  { %10 = vsyncpa [#allocation5], 0  ;;  %s307_s12 = smov [#allocation3]  }
   0x3   :  { %s16_s13 = sshll.u32 %s307_s12, 4  ;;  %s17_s13 = int_to_ptr.vmem [resolvable:$true] %s16_s13 }
   0x4   :  { %s249_s14 = scalar_lea.vmem %s17_s13, 256  ;;  %p254_p1 = scmp.lt.s32.totalorder %s17_s13, %s17_s13 }
   0x5   :  { %p250_p0 = scmp.ne.s32.totalorder %s17_s13, %s249_s14  ;;  %p255_p2 = scmp.lt.s32.totalorder %s249_s14, %s249_s14 }
   0x7   :  { %p256_p3 = por %p255_p2, %p254_p1 }
   0x9   :  { %p257_p4 = pnand %p256_p3, %p250_p0 }
   0xb   :  { %260 = shalt.err (!%p257_p4)
}
   0xc   :  { %s308_s15 = smov 128   ;;  %s309_s16 = smov 8  }
   0xd   :  { %22 = dma.hbm_to_vmem [thread:$0]  %s353_s0, 256, %s17_s13, [#allocation4], %s308_s15, %s308_s15, %s309_s16  }
   0xe   :  { %s310_s19 = smov [#allocation6]  }
   0xf   :  { %s28_s20 = sshll.u32 %s310_s19, 4  ;;  %s29_s20 = int_to_ptr.vmem [resolvable:$true] %s28_s20 }
  0x10   :  { %s269_s21 = scalar_lea.vmem %s29_s20, 2048  ;;  %p274_p6 = scmp.lt.s32.totalorder %s29_s20, %s29_s20 }
  0x11   :  { %p270_p5 = scmp.ne.s32.totalorder %s29_s20, %s269_s21  ;;  %p275_p7 = scmp.lt.s32.totalorder %s269_s21, %s269_s21 }
  0x13   :  { %p276_p8 = por %p275_p7, %p274_p6 }
  0x15   :  { %p277_p9 = pnand %p276_p8, %p270_p5 }
  0x17   :  { %280 = shalt.err (!%p277_p9)
}
  0x18   :  { %34 = dma.hbm_to_vmem [thread:$0]  %s354_s1, 2048, %s29_s20, [#allocation7], %s308_s15, %s308_s15, %s309_s16  }
  0x19   :  { %301 = dma.done.wait [#allocation4], 256  }
  0x1a   :  { %302 = vsyncadd [#allocation4], 4294967040 }
  0x1b   :  { %303 = dma.done.wait [#allocation7], 2048  }
  0x1c   :  { %304 = vsyncadd [#allocation7], 4294965248  ;;  %v68_v0 = vld [vmem:[#allocation6 + $0x78] sm:$0xff]  ;;  %v67_v1 = vld [vmem:[#allocation6 + $0x70] sm:$0xff]  ;;  %s311_s24 = smov [#allocation8]  }
  0x1d   :  { %201 = vmatprep.subr.mxu0 %v68_v0  ;;  %v66_v2 = vld [vmem:[#allocation6 + $0x68] sm:$0xff]  ;;  %v65_v3 = vld [vmem:[#allocation6 + $0x60] sm:$0xff]  ;;  %v51_v4 = vld [vmem:[#allocation3] sm:$0xff]  ;;  %s169_s25 = sshll.u32 %s311_s24, 4  ;;  %s170_s25 = int_to_ptr.vmem [resolvable:$true] %s169_s25 }
  0x1e   :  { %202 = vmatpush3.msra.mxu0 %v68_v0  ;;  %v64_v5 = vld [vmem:[#allocation6 + $0x58] sm:$0xff]  ;;  %233 = vmatprep.mubr.f32.mxu0 %v51_v4  ;;  %v63_v6 = vld [vmem:[#allocation6 + $0x50] sm:$0xff]  ;;  %v62_v7 = vld [vmem:[#allocation6 + $0x48] sm:$0xff]  ;;  %s281_s26 = scalar_lea.vmem %s170_s25, 256  ;;  %p286_p11 = scmp.lt.s32.totalorder %s170_s25, %s170_s25 }
  0x1f   :  { %203 = vmatprep.subr.mxu0 %v67_v1  ;;  %v61_v8 = vld [vmem:[#allocation6 + $0x40] sm:$0xff]  ;;  %v60_v9 = vld [vmem:[#allocation6 + $0x38] sm:$0xff]  ;;  %v59_v10 = vld [vmem:[#allocation6 + $0x30] sm:$0xff]  ;;  %p282_p10 = scmp.ne.s32.totalorder %s170_s25, %s281_s26  ;;  %p287_p12 = scmp.lt.s32.totalorder %s281_s26, %s281_s26 }
  0x20   :  { %204 = vmatpush3.msra.mxu0 %v67_v1  ;;  %v58_v11 = vld [vmem:[#allocation6 + $0x28] sm:$0xff]  ;;  %v57_v12 = vld [vmem:[#allocation6 + $0x20] sm:$0xff]  ;;  %v56_v13 = vld [vmem:[#allocation6 + $0x18] sm:$0xff] }
  0x21   :  { %205 = vmatprep.subr.mxu0 %v66_v2  ;;  %v55_v14 = vld [vmem:[#allocation6 + $0x10] sm:$0xff]  ;;  %v54_v15 = vld [vmem:[#allocation6 + $0x8] sm:$0xff]  ;;  %v53_v16 = vld [vmem:[#allocation6] sm:$0xff]  ;;  %p288_p13 = por %p287_p12, %p286_p11 }
  0x22   :  { %206 = vmatpush3.msra.mxu0 %v66_v2  ;;  %v52_v17 = vld [vmem:[#allocation3 + $0x8] sm:$0xff]  ;;  %v182_v18 = vld [vmem:[%s355_s2] ss:$0 sm:$0xff] }
  0x23   :  { %207 = vmatprep.subr.mxu0 %v65_v3  ;;  %p289_p0 = pnand %p288_p13, %p282_p10 }
  0x24   :  { %208 = vmatpush3.msra.mxu0 %v65_v3 }
  0x25   :  { %209 = vmatprep.subr.mxu0 %v64_v5 }
  0x26   :  { %210 = vmatpush3.msra.mxu0 %v64_v5 }
  0x27   :  { %211 = vmatprep.subr.mxu0 %v63_v6 }
  0x28   :  { %212 = vmatpush3.msra.mxu0 %v63_v6 }
  0x29   :  { %213 = vmatprep.subr.mxu0 %v62_v7 }
  0x2a   :  { %214 = vmatpush3.msra.mxu0 %v62_v7 }
  0x2b   :  { %215 = vmatprep.subr.mxu0 %v61_v8 }
  0x2c   :  { %216 = vmatpush3.msra.mxu0 %v61_v8 }
  0x2d   :  { %217 = vmatprep.subr.mxu0 %v60_v9 }
  0x2e   :  { %218 = vmatpush3.msra.mxu0 %v60_v9 }
  0x2f   :  { %219 = vmatprep.subr.mxu0 %v59_v10 }
  0x30   :  { %220 = vmatpush3.msra.mxu0 %v59_v10 }
  0x31   :  { %221 = vmatprep.subr.mxu0 %v58_v11 }
  0x32   :  { %222 = vmatpush3.msra.mxu0 %v58_v11 }
  0x33   :  { %223 = vmatprep.subr.mxu0 %v57_v12 }
  0x34   :  { %224 = vmatpush3.msra.mxu0 %v57_v12 }
  0x35   :  { %225 = vmatprep.subr.mxu0 %v56_v13 }
  0x36   :  { %226 = vmatpush3.msra.mxu0 %v56_v13 }
  0x37   :  { %227 = vmatprep.subr.mxu0 %v55_v14 }
  0x38   :  { %228 = vmatpush3.msra.mxu0 %v55_v14 }
  0x39   :  { %229 = vmatprep.subr.mxu0 %v54_v15 }
  0x3a   :  { %230 = vmatpush3.msra.mxu0 %v54_v15 }
  0x3b   :  { %231 = vmatprep.subr.mxu0 %v53_v16 }
  0x3c   :  { %232 = vmatpush3.msra.mxu0 %v53_v16 }
  0x3d   :  { %234 = vmatmul.mubr.f32.vlgmr.msra.gmra.mxu0 %v52_v17 }
  0xfd   :  { %v235_v19 = vpop.f32.mrf.mxu0 }
  0xfe   :  { %v161_v20 = vadd.f32 %v235_v19, %v182_v18 }
  0xff   :  { %v135_v21 = vpop.f32.mrf.mxu0 }
 0x100   :  { %163 = vst [vmem:[#allocation8 + $0x8] sm:$0xff] %v161_v20  ;;  %v160_v22 = vadd.f32 %v182_v18, %v135_v21 }
 0x102   :  { %162 = vst [vmem:[#allocation8] sm:$0xff] %v160_v22 }
 0x103   :  { %292 = shalt.err (!%p289_p0)
}
 0x104   :  { %175 = dma.vmem_to_hbm [thread:$0]  %s170_s25, 256, %s356_s3, [#allocation5], %s308_s15, %s308_s15, %s309_s16  }
 0x105   :  { %305 = dma.done.wait [#allocation5], 256  }
 0x106   :  { %306 = vsyncadd [#allocation5], 4294967040 }
 0x107   :  { %179 = vsyncpa [#allocation4], 1 }
 0x108   :  { %180 = vsyncpa [#allocation7], 1 }
 0x109   :  { %181 = vsyncpa [#allocation5], 1 }

</bundles_post_ra>
